<compile_context>
chip_gen: v7x
topology: tpu7x:2x2x1
jax: 0.10.0
libtpu: 0.0.40
codegen_flags: <defaults>
</compile_context>

<pallas_src>
import jax
import jax.numpy as jnp
from jax.experimental import pallas as pl
from jax.experimental.pallas import tpu as pltpu


def _mtl_kernel(log_vars_ref, loss_seg_ref, loss_det_ref, out_ref):
    # log_vars_ref: (task_num-1,) f32 in SMEM
    # loss_seg_ref: (1,)          f32 in SMEM
    # loss_det_ref: (1,)          f32 in SMEM
    # out_ref:      (1, 1)        f32 in VMEM
    lv0 = log_vars_ref[0]
    loss_seg = loss_seg_ref[0]
    loss_det = loss_det_ref[0]

    # Scalar-path arithmetic (otherwise-idle scalar ALU slots).
    neg_lv0 = -lv0
    bias = lv0 + loss_det  # log_vars[0] + loss_det

    # Only the exp (EUP) + one FMA (VPU) run on the vector path; a single (1,1)
    # vreg broadcast keeps vreg pressure at 1.
    precision1 = jnp.exp(jnp.full((1, 1), neg_lv0, dtype=jnp.float32))
    out_ref[...] = precision1 * loss_seg + bias


def multi_task_loss(loss_seg, loss_det, log_vars):
    """Pallas-backed equivalent of MultiTaskLossWrapper.forward."""
    log_vars = jnp.asarray(log_vars, jnp.float32)
    if log_vars.ndim != 1 or log_vars.shape[0] < 1:
        raise ValueError(
            "MultiTaskLossWrapper requires task_num >= 2 (log_vars must have "
            f"at least one element), got log_vars shape {log_vars.shape}."
        )

    # Cheap (1,) views of the scalar losses; no concatenate / stack in the graph.
    loss_seg = jnp.asarray(loss_seg, jnp.float32).reshape(1)
    loss_det = jnp.asarray(loss_det, jnp.float32).reshape(1)

    smem_spec = pl.BlockSpec(memory_space=pltpu.MemorySpace.SMEM)

    out = pl.pallas_call(
        _mtl_kernel,
        out_shape=jax.ShapeDtypeStruct((1, 1), jnp.float32),
        in_specs=[smem_spec, smem_spec, smem_spec],
        out_specs=pl.BlockSpec(memory_space=pltpu.MemorySpace.VMEM),
        cost_estimate=pl.CostEstimate(
            flops=4, transcendentals=1, bytes_accessed=16
        ),
    )(log_vars, loss_seg, loss_det)

    # Reshape (not a [0, 0] gather) back to a scalar, matching the module.
    return out.reshape(())


class MultiTaskLossWrapper:
    """Mirror of the PyTorch module; parameters initialized deterministically."""

    def __init__(self, task_num):
        if task_num < 2:
            raise ValueError("task_num must be >= 2 (forward reads log_vars[0]).")
        self.task_num = task_num
        # nn.Parameter(torch.zeros(task_num - 1))
        self.log_vars = jnp.zeros((task_num - 1,), dtype=jnp.float32)

    def __call__(self, loss_seg, loss_det):
        return multi_task_loss(loss_seg, loss_det, self.log_vars)


def _reference(loss_seg, loss_det, log_vars):
    precision1 = jnp.exp(-log_vars[0])
    loss1 = precision1 * loss_seg + log_vars[0]
    return loss_det + loss1


if __name__ == "__main__":
    key = jax.random.PRNGKey(0)
    k_seg, k_det, k_lv = jax.random.split(key, 3)

    # Small positive scalar "losses", as the forward implies.
    loss_seg = jnp.abs(jax.random.normal(k_seg, (), dtype=jnp.float32))
    loss_det = jnp.abs(jax.random.normal(k_det, (), dtype=jnp.float32))

    # 1) Module with default (zero) log_vars, task_num=2.
    model = MultiTaskLossWrapper(task_num=2)
    out = jax.block_until_ready(model(loss_seg, loss_det))
    ref = _reference(loss_seg, loss_det, model.log_vars)
    assert jnp.allclose(out, ref, rtol=1e-6, atol=1e-6), (out, ref)

    # 2) Non-trivial log_vars (exercises the exp path), task_num=3.
    log_vars = jax.random.normal(k_lv, (2,), dtype=jnp.float32)
    out2 = jax.block_until_ready(multi_task_loss(loss_seg, loss_det, log_vars))
    ref2 = _reference(loss_seg, loss_det, log_vars)
    assert jnp.allclose(out2, ref2, rtol=1e-6, atol=1e-6), (out2, ref2)

    print("KERNEL_OK")
</pallas_src>

<mosaic_0001>
module attributes {stable_mosaic.version = 11 : i64} {
  func.func @_mtl_kernel(%arg0: memref<1xf32, #tpu.memory_space<smem>>, %arg1: memref<1xf32, #tpu.memory_space<smem>>, %arg2: memref<1xf32, #tpu.memory_space<smem>>, %arg3: memref<1x1xf32, #tpu.memory_space<vmem>>) attributes {dimension_semantics = [], scalar_prefetch = 0 : i64, scratch_operands = 0 : i64, tpu.core_type = #tpu.core_type<tc>} {
    %c0 = arith.constant 0 : index
    %0 = memref.load %arg0[%c0] : memref<1xf32, #tpu.memory_space<smem>>
    %c0_0 = arith.constant 0 : index
    %1 = memref.load %arg1[%c0_0] : memref<1xf32, #tpu.memory_space<smem>>
    %c0_1 = arith.constant 0 : index
    %2 = memref.load %arg2[%c0_1] : memref<1xf32, #tpu.memory_space<smem>>
    %cst = arith.constant 0.000000e+00 : f32
    %3 = arith.subf %cst, %0 : f32
    %4 = arith.addf %0, %2 : f32
    %5 = vector.broadcast %3 : f32 to vector<1x1xf32>
    %6 = math.exp %5 : vector<1x1xf32>
    %7 = vector.broadcast %1 : f32 to vector<1x1xf32>
    %8 = arith.mulf %6, %7 : vector<1x1xf32>
    %9 = vector.broadcast %4 : f32 to vector<1x1xf32>
    %10 = arith.addf %8, %9 : vector<1x1xf32>
    %c0_2 = arith.constant 0 : index
    %c0_3 = arith.constant 0 : index
    %11 = vector.load %arg3[%c0_2, %c0_3] : memref<1x1xf32, #tpu.memory_space<vmem>>, vector<1x1xf32>
    tpu.vector_store %arg3[%c0_2, %c0_3], %10 {strides = array<i32>} : memref<1x1xf32, #tpu.memory_space<vmem>>, vector<1x1xf32>,
    return
  }
}

</mosaic_0001>

<bundles_post_ra>
// kernel: tpu_custom_call.1
= control target key start
LH: loop header
LB: loop body
LE: loop exit
PB: predicated region body
PF: predicated region fallthrough
CT: control target
= control target key end

     0   :  { %s118_s0 = inlined_call_operand.<no memory space> [shape: f32[1], index: 0, kind: input, shape index: {}]   ;;  %s119_s1 = inlined_call_operand.<no memory space> [shape: f32[1], index: 1, kind: input, shape index: {}]   ;;  %s120_s2 = inlined_call_operand.<no memory space> [shape: f32[1], index: 2, kind: input, shape index: {}]   ;;  %s121_s3 = inlined_call_operand.hbm [shape: f32[1,1], index: 3, kind: output, shape index: {}]  }
   0x1   :  { %s21_s14 = ssub.f32 0.0, %s118_s0 }
   0x2   :  { %11 = vsyncpa [#allocation6], 0  ;;  %s22_s19 = sadd.f32 %s120_s2, %s118_s0  ;;  %v26_v2 = vstv %s119_s1  ;;  %s73_s22 = smov [#allocation5]   ;;  %vm30_vm0 = vcmask 0  }
   0x3   :  { %v23_v0 = vstv %s21_s14  ;;  %s38_s23 = sshll.u32 %s73_s22, 4  ;;  %s39_s23 = int_to_ptr.vmem [resolvable:$true] %s38_s23 }
   0x4   :  { %v24_v1 = vmul.f32 1.442695, %v23_v0  ;;  %v28_v4 = vstv %s22_s19  ;;  %s49_s24 = scalar_lea.vmem %s39_s23, 16  ;;  %s53_s25 = scalar_lea.vmem %s39_s23, 32 }
   0x5   :  { %p50_p0 = scmp.ne.s32.totalorder %s39_s23, %s49_s24  ;;  %p54_p1 = scmp.lt.s32.totalorder %s39_s23, %s39_s23 }
   0x6   :  { %47 = vpow2.f32 %v24_v1  ;;  %p55_p2 = scmp.lt.s32.totalorder %s53_s25, %s49_s24 }
   0x8   :  { %p56_p3 = por %p55_p2, %p54_p1 }
   0xa   :  { %p57_p4 = pnand %p56_p3, %p50_p0 }
  0x10   :  { %v48_v3 = vpop.eup %47 }
  0x11   :  { %v27_v5 = vmul.f32 %v48_v3, %v26_v2 }
  0x13   :  { %v29_v6 = vadd.f32 %v28_v4, %v27_v5 }
  0x15   :  { %31 = vst.msk [vmem:[#allocation5] sm:$0x1] %vm30_vm0, %v29_v6 }
  0x16   :  { %60 = shalt.err (!%p57_p4)
}
  0x17   :  { %s61_s1 = scalar_lea.hbm %s121_s3, 16 }
  0x18   :  { %p62_p5 = scmp.ne.s32.totalorder %s121_s3, %s61_s1  ;;  %p65_p6 = scmp.lt.u32.totalorder %s61_s1, %s121_s3 }
  0x1a   :  { %p67_p7 = pnand %p65_p6, %p62_p5 }
  0x1c   :  { %70 = shalt.err (!%p67_p7)
}
  0x1d   :  { %41 = dma.vmem_to_hbm [thread:$0]  %s39_s23, 16, %s121_s3, [#allocation6]  }
  0x1e   :  { %71 = dma.done.wait [#allocation6], 16  }
  0x1f   :  { %72 = vsyncadd [#allocation6], 4294967280 }
  0x20   :  { %45 = vsyncpa [#allocation6], 1 }

</bundles_post_ra>
